<compile_context>
chip_gen: v5e
topology: v5e:2x2
jax: 0.10.0
libtpu: 0.0.40
codegen_flags: <defaults>
</compile_context>

<pallas_src>
import functools

import jax
import jax.numpy as jnp
from jax.experimental import pallas as pl
from jax.experimental.pallas import tpu as pltpu


def _conv3x3_lrelu_kernel(x_ref, w_ref, b_ref, o_ref, *, Wp, Lt, nrt,
                          negative_slope, matmul_dtype):
    # x_ref: (Cin_p, Lpad2)   one batch element, zero-padded image flattened row-major
    #                         (channels on sublanes, flat pixels on lanes, +2 tail zeros).
    # w_ref: (Cout, 9*Cin_p)  taps flattened k-major (k = dy*3 + dx), channel minor.
    # b_ref: (Cout, 1)
    # o_ref: (Cout, Lt)       lane-dense output tile, Lt = tH*(W+2) flat pixels.
    if nrt == 1:
        base = 0                                           # fully static path
    else:
        base = pl.multiple_of(pl.program_id(1) * Lt, 128)  # Lt % 128 == 0 by construction

    span = Lt + 2 * Wp + 2                 # covers every tap offset for this row tile
    xt = x_ref[:, pl.ds(base, span)]       # (Cin_p, span) single slab load

    taps = []
    for dy in range(3):
        for dx in range(3):
            off = dy * Wp + dx
            taps.append(xt[:, off:off + Lt])       # (Cin_p, Lt) static lane-offset slice
    patch = jnp.concatenate(taps, axis=0)          # (9*Cin_p, Lt), sublane-tile aligned

    w = w_ref[...]
    if matmul_dtype is not None:                   # opt-in bf16 operands for v6e/v7x MXU
        patch = patch.astype(matmul_dtype)
        w = w.astype(matmul_dtype)

    acc = jnp.dot(w, patch, preferred_element_type=jnp.float32)   # (Cout, Lt), one MXU pass
    acc = acc + b_ref[...]
    acc = jnp.maximum(acc, negative_slope * acc)                  # LeakyReLU(0.2)
    o_ref[...] = acc.astype(o_ref.dtype)


def conv_block1_forward(x_nchw, weight_oihw, bias, *, negative_slope=0.2,
                        matmul_dtype=None, vmem_budget_bytes=8 * 1024 * 1024):
    """Conv2d(k=3, s=1, p=1, bias=True) + LeakyReLU(0.2).

    x_nchw:      (B, Cin, H, W)
    weight_oihw: (Cout, Cin, 3, 3)   (PyTorch layout)
    bias:        (Cout,)
    returns:     (B, Cout, H, W)
    """
    B, Cin, H, W = x_nchw.shape
    Cout = weight_oihw.shape[0]
    Wp = W + 2
    Cin_p = max(8, ((Cin + 7) // 8) * 8)      # pad channels to the f32 sublane tile

    itemsize = jnp.dtype(x_nchw.dtype).itemsize

    # --- cheap XLA-side layout prep ---
    # zero-pad channels -> Cin_p and spatial halo (+1), flatten (H+2, W+2) row-major,
    # and add 2 trailing zeros so the last tap's flat window stays in bounds.
    x_pad = jnp.pad(x_nchw, ((0, 0), (0, Cin_p - Cin), (1, 1), (1, 1)))
    x_flat = x_pad.reshape(B, Cin_p, (H + 2) * Wp)
    x_flat = jnp.pad(x_flat, ((0, 0), (0, 0), (0, 2)))
    Lpad2 = x_flat.shape[-1]

    # (Cout, Cin, 3, 3) -> (Cout, 3, 3, Cin_p) -> (Cout, 9*Cin_p): tap-major, channel-minor.
    w_pad = jnp.pad(weight_oihw, ((0, 0), (0, Cin_p - Cin), (0, 0), (0, 0)))
    w_mat = jnp.transpose(w_pad, (0, 2, 3, 1)).reshape(Cout, 9 * Cin_p)
    b_col = bias.reshape(Cout, 1)

    # --- row tiling: largest tH dividing H whose flat tile is lane-aligned & fits budget ---
    tH = H
    for cand in range(H, 0, -1):
        if H % cand:
            continue
        Lt_c = cand * Wp
        if cand != H and Lt_c % 128 != 0:     # out-block lane constraint
            continue
        step_bytes = (2 * Cout * Lt_c * itemsize            # double-buffered output block
                      + 9 * Cin_p * Lt_c * 4                # in-kernel patch
                      + Cout * Lt_c * 4)                    # f32 accumulator
        if step_bytes <= vmem_budget_bytes:
            tH = cand
            break
    nrt = H // tH
    Lt = tH * Wp

    kernel = functools.partial(
        _conv3x3_lrelu_kernel, Wp=Wp, Lt=Lt, nrt=nrt,
        negative_slope=negative_slope, matmul_dtype=matmul_dtype)

    # Only raise the scoped-VMEM limit if our estimate exceeds the smallest default (16 MiB,
    # v5e); cap at 64 MiB so the setting stays valid on v7x's smaller physical VMEM.
    est_vmem = (2 * (Cin_p * Lpad2 + Cout * Lt) * itemsize
                + (9 * Cin_p + Cout) * Lt * 4 + Cout * (9 * Cin_p + 1) * 4)
    vmem_limit = min(2 * est_vmem, 64 * 1024 * 1024) if est_vmem > 16 * 1024 * 1024 else None

    out_flat = pl.pallas_call(
        kernel,
        out_shape=jax.ShapeDtypeStruct((B, Cout, H * Wp), x_nchw.dtype),
        grid=(B, nrt),
        in_specs=[
            pl.BlockSpec((None, Cin_p, Lpad2), lambda b, r: (b, 0, 0)),
            pl.BlockSpec((Cout, 9 * Cin_p), lambda b, r: (0, 0)),
            pl.BlockSpec((Cout, 1), lambda b, r: (0, 0)),
        ],
        out_specs=pl.BlockSpec((None, Cout, Lt), lambda b, r: (b, 0, r)),
        compiler_params=pltpu.CompilerParams(
            dimension_semantics=("parallel", "arbitrary"),
            vmem_limit_bytes=vmem_limit),
    )(x_flat, w_mat, b_col)

    # (B, Cout, H*(W+2)) -> (B, Cout, H, W+2) is a free reshape; drop the 2 junk columns.
    return out_flat.reshape(B, Cout, H, Wp)[:, :, :, :W]


def _reference(x, weight, bias):
    y = jax.lax.conv_general_dilated(
        x, weight, window_strides=(1, 1), padding=((1, 1), (1, 1)),
        dimension_numbers=("NCHW", "OIHW", "NCHW"))
    y = y + bias[None, :, None, None]
    return jnp.where(y > 0, y, 0.2 * y)


if __name__ == "__main__":
    B, Cin, Cout, H, W = 2, 4, 8, 16, 16

    key = jax.random.PRNGKey(0)
    kx, kw, kb = jax.random.split(key, 3)
    x = jax.random.normal(kx, (B, Cin, H, W), dtype=jnp.float32)
    # Deterministic synthetic parameters (shapes from nn.Conv2d(Cin, Cout, 3)).
    fan_in = Cin * 3 * 3
    bound = 1.0 / (fan_in ** 0.5)
    weight = jax.random.uniform(kw, (Cout, Cin, 3, 3), jnp.float32,
                                minval=-bound, maxval=bound)
    bias = jax.random.uniform(kb, (Cout,), jnp.float32,
                              minval=-bound, maxval=bound)

    out = conv_block1_forward(x, weight, bias)
    out = jax.block_until_ready(out)

    ref = jax.block_until_ready(_reference(x, weight, bias))
    assert out.shape == (B, Cout, H, W)
    assert jnp.allclose(out, ref, atol=1e-4, rtol=1e-4), "mismatch vs reference"

    print("KERNEL_OK")
</pallas_src>

<mosaic_0001>
module attributes {stable_mosaic.version = 11 : i64} {
  func.func @_conv3x3_lrelu_kernel(%arg0: i32, %arg1: i32, %arg2: memref<1x8x326xf32, #tpu.memory_space<vmem>>, %arg3: memref<8x72xf32, #tpu.memory_space<vmem>>, %arg4: memref<8x1xf32, #tpu.memory_space<vmem>>, %arg5: memref<1x8x288xf32, #tpu.memory_space<vmem>>) attributes {dimension_semantics = [#tpu.dimension_semantics<parallel>, #tpu.dimension_semantics<arbitrary>], iteration_bounds = array<i64: 2, 1>, scalar_prefetch = 0 : i64, scratch_operands = 0 : i64, tpu.core_type = #tpu.core_type<tc>, window_params = [{transform_indices = @transform_0, window_bounds = array<i64: 1, 8, 326>}, {pipeline_mode = #tpu.pipeline_mode<synchronous>, transform_indices = @transform_1, window_bounds = array<i64: 8, 72>}, {pipeline_mode = #tpu.pipeline_mode<synchronous>, transform_indices = @transform_2, window_bounds = array<i64: 8, 1>}, {transform_indices = @transform_3, window_bounds = array<i64: 1, 8, 288>}]} {
    %c0 = arith.constant 0 : index
    %c0_0 = arith.constant 0 : index
    %c0_1 = arith.constant 0 : index
    %0 = vector.load %arg2[%c0, %c0_0, %c0_1] : memref<1x8x326xf32, #tpu.memory_space<vmem>>, vector<1x8x326xf32>
    %1 = vector.shape_cast %0 : vector<1x8x326xf32> to vector<8x326xf32>
    %2 = vector.extract_strided_slice %1 {offsets = [0, 0], sizes = [8, 288], strides = [1, 1]} : vector<8x326xf32> to vector<8x288xf32>
    %3 = vector.extract_strided_slice %1 {offsets = [0, 1], sizes = [8, 288], strides = [1, 1]} : vector<8x326xf32> to vector<8x288xf32>
    %4 = vector.extract_strided_slice %1 {offsets = [0, 2], sizes = [8, 288], strides = [1, 1]} : vector<8x326xf32> to vector<8x288xf32>
    %5 = vector.extract_strided_slice %1 {offsets = [0, 18], sizes = [8, 288], strides = [1, 1]} : vector<8x326xf32> to vector<8x288xf32>
    %6 = vector.extract_strided_slice %1 {offsets = [0, 19], sizes = [8, 288], strides = [1, 1]} : vector<8x326xf32> to vector<8x288xf32>
    %7 = vector.extract_strided_slice %1 {offsets = [0, 20], sizes = [8, 288], strides = [1, 1]} : vector<8x326xf32> to vector<8x288xf32>
    %8 = vector.extract_strided_slice %1 {offsets = [0, 36], sizes = [8, 288], strides = [1, 1]} : vector<8x326xf32> to vector<8x288xf32>
    %9 = vector.extract_strided_slice %1 {offsets = [0, 37], sizes = [8, 288], strides = [1, 1]} : vector<8x326xf32> to vector<8x288xf32>
    %10 = vector.extract_strided_slice %1 {offsets = [0, 38], sizes = [8, 288], strides = [1, 1]} : vector<8x326xf32> to vector<8x288xf32>
    %11 = tpu.concatenate %2, %3, %4, %5, %6, %7, %8, %9, %10 in 0 : vector<8x288xf32>, vector<8x288xf32>, vector<8x288xf32>, vector<8x288xf32>, vector<8x288xf32>, vector<8x288xf32>, vector<8x288xf32>, vector<8x288xf32>, vector<8x288xf32> -> vector<72x288xf32>
    %c0_2 = arith.constant 0 : index
    %c0_3 = arith.constant 0 : index
    %12 = vector.load %arg3[%c0_2, %c0_3] : memref<8x72xf32, #tpu.memory_space<vmem>>, vector<8x72xf32>
    %cst = arith.constant dense<0.000000e+00> : vector<8x288xf32>
    %13 = tpu.matmul %12, %11, %cst {dimension_numbers = #tpu.dot_dimension_numbers<[1], [0], [0], [1], [0, 0, 1, 1], [], []>} : vector<8x72xf32>, vector<72x288xf32>, vector<8x288xf32> -> vector<8x288xf32>
    %c0_4 = arith.constant 0 : index
    %c0_5 = arith.constant 0 : index
    %14 = vector.load %arg4[%c0_4, %c0_5] : memref<8x1xf32, #tpu.memory_space<vmem>>, vector<8x1xf32>
    %15 = vector.broadcast %14 : vector<8x1xf32> to vector<8x288xf32>
    %16 = arith.addf %13, %15 : vector<8x288xf32>
    %cst_6 = arith.constant 2.000000e-01 : f32
    %17 = vector.broadcast %cst_6 : f32 to vector<8x288xf32>
    %18 = arith.mulf %17, %16 : vector<8x288xf32>
    %19 = arith.maximumf %16, %18 : vector<8x288xf32>
    %c0_7 = arith.constant 0 : index
    %c0_8 = arith.constant 0 : index
    %c0_9 = arith.constant 0 : index
    %20 = vector.load %arg5[%c0_7, %c0_8, %c0_9] : memref<1x8x288xf32, #tpu.memory_space<vmem>>, vector<1x8x288xf32>
    %21 = vector.shape_cast %20 : vector<1x8x288xf32> to vector<8x288xf32>
    %22 = vector.shape_cast %19 : vector<8x288xf32> to vector<1x8x288xf32>
    tpu.vector_store %arg5[%c0_7, %c0_8, %c0_9], %22 {strides = array<i32>} : memref<1x8x288xf32, #tpu.memory_space<vmem>>, vector<1x8x288xf32>,
    return
  }
  func.func @transform_0(%arg0: i32, %arg1: i32) -> (i32, i32, i32) {
    %c0_i32 = arith.constant 0 : i32
    %c0_i32_0 = arith.constant 0 : i32
    %c0_i32_1 = arith.constant 0 : i32
    return %arg0, %c0_i32, %c0_i32_0 : i32, i32, i32
  }
  func.func @transform_1(%arg0: i32, %arg1: i32) -> (i32, i32) {
    %c0_i32 = arith.constant 0 : i32
    %c0_i32_0 = arith.constant 0 : i32
    %c0_i32_1 = arith.constant 0 : i32
    return %c0_i32, %c0_i32_0 : i32, i32
  }
  func.func @transform_2(%arg0: i32, %arg1: i32) -> (i32, i32) {
    %c0_i32 = arith.constant 0 : i32
    %c0_i32_0 = arith.constant 0 : i32
    %c0_i32_1 = arith.constant 0 : i32
    return %c0_i32, %c0_i32_0 : i32, i32
  }
  func.func @transform_3(%arg0: i32, %arg1: i32) -> (i32, i32, i32) {
    %c0_i32 = arith.constant 0 : i32
    %c0_i32_0 = arith.constant 0 : i32
    return %arg0, %c0_i32, %arg1 : i32, i32, i32
  }
}

</mosaic_0001>

<bundles_post_ra>
// kernel: tpu_custom_call.1
= control target key start
LH: loop header
LB: loop body
LE: loop exit
PB: predicated region body
PF: predicated region fallthrough
CT: control target
= control target key end

     0   :  { %8 = vsyncpa [#allocation3], 0  ;;  %s908_s0 = inlined_call_operand.hbm [shape: f32[2,8,326], index: 0, kind: input, shape index: {}]   ;;  %s909_s1 = inlined_call_operand.vmem [shape: f32[8,72], index: 1, kind: input, shape index: {}]   ;;  %s910_s2 = inlined_call_operand.vmem [shape: f32[8,1], index: 2, kind: input, shape index: {}]   ;;  %s911_s3 = inlined_call_operand.hbm [shape: f32[2,8,288], index: 3, kind: output, shape index: {}]  }
   0x1   :  { %10 = vsyncpa [#allocation3 + $0x1], 0 }
   0x2   :  { %11 = vsyncpa [#allocation4], 0 }
   0x3   :  { %13 = vsyncpa [#allocation4 + $0x1], 0  ;;  %s759_s12 = smov 0   ;;  %s761_s13 = smov 0  }
   0x4   :  { %s763_s14 = smov 0   ;;  %s765_s15 = smov 0  }
   0x5   :  { %s767_s16 = smov 0   ;;  %s769_s17 = smov 0  }
   0x6 LB: > { %s487_s18 = sadd.s32 4294967295, %s728_s17   ;;  %s488_s19 = sadd.s32 4294967294, %s728_s17   ;;  %s728_s17 = sphi %s769_s17, %s19_s17   ;;  %s724_s16 = sphi %s767_s16, %s920_s16   ;;  %s720_s15 = sphi %s765_s15, %s919_s15   ;;  %s716_s14 = sphi %s763_s14, %s918_s14   ;;  %s712_s13 = sphi %s761_s13, %s917_s13   ;;  %s708_s12 = sphi %s759_s12, %s916_s12  }
   0x7   : > { %s31_s20 = sadd.s32 1, %s724_s16  ;;  %s38_s21 = sadd.s32 1, %s716_s14 }
   0x8   : > { %p33_p0 = scmp.ge.s32.totalorder %s31_s20, 2  ;;  %p45_p1 = scmp.ne.s32.totalorder %s716_s14, %s712_s13 }
   0x9   : > { %p46_p2 = scmp.eq.s32.totalorder %s728_s17, 0  ;;  %p51_p3 = scmp.ne.s32.totalorder %s712_s13, %s708_s12 }
   0xa   : > { %s922_s20 = smov (%p33_p0, %s31_s20), 0  ;;  %p52_p5 = scmp.eq.s32.totalorder %s487_s18, 0 }
   0xb   : > { %p800_p4 = por %p46_p2, %p45_p1  ;;  %s35_s23 = ssub.s32 %s724_s16, %s922_s20 }
   0xc   : > { %p119_p6 = scmp.eq.s32.totalorder %s487_s18, 1  ;;  %p36_p7 = scmp.eq.s32.totalorder %s35_s23, 0 }
   0xd   : > { %p806_p8 = por %p52_p5, %p51_p3  ;;  %p125_p10 = scmp.eq.s32.totalorder %s488_s19, 1 }
   0xe   : > { %p810_p9 = por %p119_p6, %p45_p1  ;;  %p490_p12 = scmp.ge.s32.totalorder %s728_s17, 2 }
   0xf   : > { %s815_s26 = scalar_select %p36_p7, %s716_s14, %s38_s21  }
  0x10   : > { %p817_p11 = por %p125_p10, %p51_p3  ;;  %p515_p13 = scmp.lt.s32.totalorder %s728_s17, 2 }
  0x11   : > { %s151_s28 = sand.u32 1, %s716_s14   ;;  %s500_s30 = smul.u32 24, %s724_s16 }
  0x12   : > { %s499_s29 = smul.u32 24, %s151_s28  ;;  %p508_p0 = pnand %p515_p13, %p800_p4 }
  0x13   : > { %p492_p2 = scmp.ge.s32.totalorder %s728_s17, 1  ;;  %s160_s6 = scalar_lea.hbm %s908_s0, %s500_s30 }
  0x14   : > { %s155_s7 = scalar_lea.vmem [#allocation2], %s499_s29  ;;  %s162_s9 = sshll.u32 %s160_s6, 4  ;;  %s163_s9 = int_to_ptr.hbm [resolvable:$true] %s162_s9 }
  0x15   : > { %s164_s8 = sshll.u32 %s155_s7, 4  ;;  %s152_s10 = scalar_lea.sflag [#allocation3], %s151_s28  ;;  %s165_s8 = int_to_ptr.vmem [resolvable:$true] %s164_s8 }
  0x16   : > { %510 = dma.hbm_to_vmem [thread:$0]  (!%p508_p0), %s163_s9, 384, %s165_s8, %s152_s10  }
  0x17   : > { %p169_p1 = scmp.lt.s32.totalorder %s728_s17, 3 }
  0x19   : > { %p170_p3 = pnand %p492_p2, %p169_p1 }
  0x1a   : > { %s833_s11 = sand.u32 (!%p170_p3), 1, %s712_s13  }
  0x1b   : > { %173 = sbr.rel (%p170_p3) target bundleno = 331 (0x14b), region = 32  ;;  %s176_s19 = scalar_lea.sflag (!%p170_p3), [#allocation3], %s833_s11 }
  0x1c   : > { %s501_s18 = smul.u32 (!%p170_p3), 24, %s833_s11 }
  0x1e   : > { %s179_s21 = scalar_lea.vmem (!%p170_p3), [#allocation2], %s501_s18 }
  0x20   : > { %699 = dma.done.wait (%p806_p8), %s176_s19, 384  }
  0x21   : > { %701 = vsyncadd (%p806_p8), %s176_s19, 4294966912  ;;  %v843_v0 = vld [vmem:[%s179_s21] sm:$0xff]  ;;  %v845_v1 = vld [vmem:[%s179_s21 + $0x10] sm:$0xff]  ;;  %s730_s22 = smov 92   ;;  %s731_s23 = smov 90   ;;  %vm300_vm0 = vcmask 736256  }
  0x22   : > { %v584_v2 = vpack.i.bf16 %v843_v0, %v845_v1  ;;  %s732_s28 = smov 108   ;;  %v849_v3 = vld [vmem:[%s179_s21 + $0x8] sm:$0xff]  ;;  %s733_s29 = smov 91   ;;  %vm288_vm1 = vcmask 744448   ;;  %vm276_vm2 = vcmask 752640   ;;  %v738_v22 = vmov 0  }
  0x23   : > { %s734_s24 = smov 109   ;;  %s735_s30 = smov 110   ;;  %v307_v21 = vld [vmem:[%s910_s2] sm:$0xff]  ;;  %614 = vset.pattern.permute.xlu1 %v738_v22  ;;  %615 = vset.pattern.permute.xlu0 %v738_v22  ;;  %vm264_vm3 = vcmask 883712   ;;  %vm252_vm4 = vcmask 891904   ;;  %vm240_vm5 = vcmask 900096  }
  0x24   : > { %585 = vrot.lane.b32.xlu1 %v584_v2, %s730_s22  ;;  %575 = vrot.lane.b32.xlu0 %v584_v2, %s731_s23  ;;  %s736_s4 = smov 126   ;;  %s737_s5 = smov 127   ;;  %vm228_vm6 = vcmask 1031168   ;;  %v306_v50 = vld [vmem:[%s909_s1] sm:$0xff]  ;;  %vm313_vm7 = vcmask 588800   ;;  %vm216_vm8 = vcmask 1039360  }
  0x25   : > { %590 = vrot.lane.b32.xlu2 %v584_v2, %s732_s28  ;;  %s502_s10 = smul.u32 24, %s720_s15  ;;  %vm385_vm9 = vcmask 261120  }
  0x2c   : > { %296 = vrot.lane.b32.xlu1 %v849_v3, %s731_s23  ;;  %580 = vrot.lane.b32.xlu0 %v584_v2, %s733_s29  ;;  %s202_s23 = scalar_lea.vmem [#allocation5], %s501_s18 }
  0x2d   : > { %284 = vrot.lane.b32.xlu2 %v849_v3, %s733_s29  ;;  %s388_s29 = scalar_lea.sflag [#allocation4], %s833_s11 }
  0x34   : > { %272 = vrot.lane.b32.xlu1 %v849_v3, %s730_s22  ;;  %595 = vrot.lane.b32.xlu0 %v584_v2, %s734_s24  ;;  %s401_s22 = scalar_lea.hbm %s911_s3, %s502_s10 }
  0x35   : > { %600 = vrot.lane.b32.xlu2 %v584_v2, %s735_s30  ;;  %s405_s15 = sshll.u32 %s401_s22, 4  ;;  %s406_s15 = int_to_ptr.hbm [resolvable:$true] %s405_s15 }
  0x3c   : > { %605 = vrot.lane.b32.xlu1 %v584_v2, %s736_s4  ;;  %260 = vrot.lane.b32.xlu0 %v849_v3, %s732_s28  ;;  %s403_s28 = sshll.u32 %s202_s23, 4  ;;  %s404_s28 = int_to_ptr.vmem [resolvable:$true] %s403_s28 }
  0x3d   : > { %248 = vrot.lane.b32.xlu2 %v849_v3, %s734_s24  ;;  %s660_s24 = sshra.s32 %s406_s15, 4  ;;  %s661_s24 = int_to_ptr.hbm [resolvable:$true] %s660_s24 }
  0x3e   : > { %p667_p7 = scmp.lt.s32.totalorder %s661_s24, %s911_s3 }
  0x44   : > { %236 = vrot.lane.b32.xlu1 %v849_v3, %s735_s30  ;;  %610 = vrot.lane.b32.xlu0 %v584_v2, %s737_s5  ;;  %s662_s30 = scalar_lea.hbm %s661_s24, 24 }
  0x45   : > { %224 = vrot.lane.b32.xlu2 %v849_v3, %s736_s4  ;;  %p663_p4 = scmp.ne.s32.totalorder %s661_s24, %s662_s30 }
  0x47   : > { %p664_p5 = pnand %p663_p4, %p810_p9 }
  0x49   : > { %p665_p6 = pneg %p664_p5 }
  0x4c   : > { %212 = vrot.lane.b32.xlu0 %v849_v3, %s737_s5  ;;  %310 = vperm.xlu1 %614, %v307_v21   ;;  %s666_s5 = scalar_lea.hbm %s911_s3, 48 }
  0x4d   : > { %p668_p8 = scmp.lt.s32.totalorder %s666_s5, %s662_s30 }
  0x4f   : > { %p669_p10 = por %p668_p8, %p667_p7 }
  0x51   : > { %p670_p13 = pnand %p669_p10, %p665_p6 }
  0x7f   : > { %v591_v4 = vpop.permute.xlu2 %590 }
  0x80   : > { %v592_v20 = vunpack.i.l.bf16 %v591_v4  ;;  %v593_v30 = vunpack.i.h.bf16 %v591_v4 }
  0x87   : > { %v285_v8 = vpop.permute.xlu2 %284 }
  0x8f   : > { %v601_v19 = vpop.permute.xlu2 %600 }
  0x90   : > { %v602_v29 = vunpack.i.l.bf16 %v601_v19  ;;  %v603_v40 = vunpack.i.h.bf16 %v601_v19 }
  0x96   : > { %v586_v5 = vpop.permute.xlu1 %585  ;;  %v576_v6 = vpop.permute.xlu0 %575 }
  0x97   : > { %v577_v7 = vunpack.i.l.bf16 %v576_v6  ;;  %v578_v9 = vunpack.i.h.bf16 %v576_v6  ;;  %v587_v18 = vunpack.i.l.bf16 %v586_v5  ;;  %v588_v23 = vunpack.i.h.bf16 %v586_v5  ;;  %v249_v32 = vpop.permute.xlu2 %248 }
  0x99   : > { %364 = vmatpush.msra.mxu2 %v577_v7 }
  0x9e   : > { %v297_v10 = vpop.permute.xlu1 %296  ;;  %v581_v11 = vpop.permute.xlu0 %580 }
  0x9f   : > { %v583_v12 = vunpack.i.h.bf16 %v581_v11  ;;  %v301_v13 = vsel %vm300_vm0, %v578_v9, %v297_v10  ;;  %v302_v14 = vsel %vm300_vm0, %v297_v10, %v577_v7  ;;  %v582_v15 = vunpack.i.l.bf16 %v581_v11  ;;  %v225_v42 = vpop.permute.xlu2 %224 }
  0xa0   : > { %324 = vmatpush.msra.mxu0 %v301_v13  ;;  %344 = vmatpush.msra.mxu1 %v302_v14 }
  0xa1   : > { %365 = vmatpush.msra.mxu2 %v582_v15  ;;  %v289_v16 = vsel %vm288_vm1, %v583_v12, %v285_v8  ;;  %v290_v17 = vsel %vm288_vm1, %v285_v8, %v582_v15 }
  0xa2   : > { %325 = vmatpush.msra.mxu0 %v289_v16  ;;  %345 = vmatpush.msra.mxu1 %v290_v17 }
  0xa3   : > { %366 = vmatpush.msra.mxu2 %v587_v18 }
  0xa5   : > { %367 = vmatpush.msra.mxu2 %v592_v20 }
  0xa6   : > { %v273_v24 = vpop.permute.xlu1 %272  ;;  %v596_v25 = vpop.permute.xlu0 %595 }
  0xa7   : > { %v277_v26 = vsel %vm276_vm2, %v588_v23, %v273_v24  ;;  %v278_v27 = vsel %vm276_vm2, %v273_v24, %v587_v18  ;;  %v597_v28 = vunpack.i.l.bf16 %v596_v25  ;;  %v598_v31 = vunpack.i.h.bf16 %v596_v25 }
  0xa8   : > { %326 = vmatpush.msra.mxu0 %v277_v26  ;;  %346 = vmatpush.msra.mxu1 %v278_v27 }
  0xa9   : > { %368 = vmatpush.msra.mxu2 %v597_v28  ;;  %v253_v38 = vsel %vm252_vm4, %v598_v31, %v249_v32  ;;  %v254_v39 = vsel %vm252_vm4, %v249_v32, %v597_v28 }
  0xab   : > { %369 = vmatpush.msra.mxu2 %v602_v29 }
  0xae   : > { %v606_v33 = vpop.permute.xlu1 %605  ;;  %v261_v34 = vpop.permute.xlu0 %260 }
  0xaf   : > { %v265_v35 = vsel %vm264_vm3, %v593_v30, %v261_v34  ;;  %v266_v36 = vsel %vm264_vm3, %v261_v34, %v592_v20  ;;  %v607_v37 = vunpack.i.l.bf16 %v606_v33  ;;  %v608_v41 = vunpack.i.h.bf16 %v606_v33 }
  0xb0   : > { %327 = vmatpush.msra.mxu0 %v265_v35  ;;  %347 = vmatpush.msra.mxu1 %v266_v36 }
  0xb1   : > { %370 = vmatpush.msra.mxu2 %v607_v37  ;;  %v229_v48 = vsel %vm228_vm6, %v608_v41, %v225_v42  ;;  %v230_v49 = vsel %vm228_vm6, %v225_v42, %v607_v37 }
  0xb2   : > { %328 = vmatpush.msra.mxu0 %v253_v38  ;;  %348 = vmatpush.msra.mxu1 %v254_v39 }
  0xb6   : > { %v237_v43 = vpop.permute.xlu1 %236  ;;  %v611_v44 = vpop.permute.xlu0 %610 }
  0xb7   : > { %v241_v45 = vsel %vm240_vm5, %v603_v40, %v237_v43  ;;  %v242_v46 = vsel %vm240_vm5, %v237_v43, %v602_v29  ;;  %v612_v47 = vunpack.i.l.bf16 %v611_v44  ;;  %v613_v51 = vunpack.i.h.bf16 %v611_v44 }
  0xb8   : > { %329 = vmatpush.msra.mxu0 %v241_v45  ;;  %349 = vmatpush.msra.mxu1 %v242_v46 }
  0xb9   : > { %371 = vmatpush.msra.mxu2 %v612_v47 }
  0xba   : > { %330 = vmatpush.msra.mxu0 %v229_v48  ;;  %350 = vmatpush.msra.mxu1 %v230_v49 }
  0xbb   : > { %372 = vmatpush.msra.mxu2 %v845_v1 }
  0xbc   : > { %495 = vmatmul.msk.f32.vlgmr.msra.gmra.mxu2 %vm313_vm7, %v306_v50 }
  0xbe   : > { %v213_v52 = vpop.permute.xlu0 %212  ;;  %v311_v55 = vpop.permute.xlu1 %310 }
  0xbf   : > { %v217_v53 = vsel %vm216_vm8, %v613_v51, %v213_v52  ;;  %v218_v54 = vsel %vm216_vm8, %v213_v52, %v612_v47 }
  0xc0   : > { %331 = vmatpush.msra.mxu0 %v217_v53  ;;  %351 = vmatpush.msra.mxu1 %v218_v54 }
  0xc2   : > { %332 = vmatpush.msra.mxu0 %v843_v0  ;;  %352 = vmatpush.msra.mxu1 %v849_v3 }
  0xc3   : > { %493 = vmatmul.msk.f32.vlgmr.msra.gmra.mxu0 %vm313_vm7, %v306_v50  ;;  %494 = vmatmul.msk.f32.vlgmr.msra.gmra.mxu1 %vm313_vm7, %v306_v50 }
 0x13f   : > { %v374_v56 = vpop.f32.mrf.mxu2 }
 0x140   : > { %v375_v57 = vadd.f32 %v374_v56, %v311_v55  ;;  %v334_v58 = vpop.f32.mrf.mxu0  ;;  %v354_v59 = vpop.f32.mrf.mxu1 }
 0x141   : > { %v335_v60 = vadd.f32 %v334_v58, %v311_v55  ;;  %v355_v61 = vadd.f32 %v354_v59, %v311_v55 }
 0x142   : > { %v379_v62 = vmul.f32 0.2, %v375_v57 }
 0x143   : > { %v377_v63 = vmul.f32 0.2, %v335_v60  ;;  %v378_v0 = vmul.f32 0.2, %v355_v61 }
 0x144   : > { %v382_v1 = vmax.f32 %v375_v57, %v379_v62 }
 0x145   : > { %v380_v2 = vmax.f32 %v335_v60, %v377_v63  ;;  %v381_v3 = vmax.f32 %v355_v61, %v378_v0 }
 0x146   : > { %386 = vst.msk [vmem:[%s202_s23 + $0x10] sm:$0xff] %vm385_vm9, %v382_v1 }
 0x147   : > { %383 = vst [vmem:[%s202_s23] sm:$0xff] %v380_v2 }
 0x148   : > { %384 = vst [vmem:[%s202_s23 + $0x8] sm:$0xff] %v381_v3 }
 0x149   : > { %673 = shalt.err (!%p670_p13)
}
 0x14a   : > { %505 = dma.vmem_to_hbm [thread:$0]  (%p810_p9), %s404_s28, 384, %s406_s15, %s388_s29  }
 0x14b PF: > { %s417_s11 = sand.u32 1, %s708_s12   ;;  %p512_p0 = pnand %p490_p12, %p817_p11 }
 0x14c   : > { %s418_s8 = scalar_lea.sflag [#allocation4], %s417_s11 }
 0x14d   : > { %p513_p2 = pneg %p512_p0 }
 0x14f   : > { %703 = dma.done.wait (%p513_p2), %s418_s8, 384  }
 0x150   : > { %705 = vsyncadd (%p513_p2), %s418_s8, 4294966912  ;;  %s19_s17 = sadd.s32 1, %s728_s17   ;;  %s916_s12 = smov %s712_s13 }
 0x151   : > { %p16_p1 = scmp.ge.s32.totalorder %s19_s17, 4   ;;  %s917_s13 = smov %s716_s14 }
 0x152   : > { %s918_s14 = smov %s815_s26  ;;  %s919_s15 = smov %s724_s16 }
 0x153   : > { %s920_s16 = smov %s922_s20  ;;  %18 = sbr.rel (!%p16_p1) target bundleno = 6 (0x6), region = 77 }
 0x158   :  { %424 = vsyncpa [#allocation3], 1 }
 0x159   :  { %426 = vsyncpa [#allocation3 + $0x1], 1 }
 0x15a   :  { %427 = vsyncpa [#allocation4], 1 }
 0x15b   :  { %429 = vsyncpa [#allocation4 + $0x1], 1 }

</bundles_post_ra>
